<compile_context>
chip_gen: v7x
topology: tpu7x:2x2x1
jax: 0.10.0
libtpu: 0.0.40
codegen_flags: <defaults>
</compile_context>

<pallas_src>
import functools
import math

import jax
import jax.numpy as jnp
import numpy as np
from jax import lax
from jax.experimental import pallas as pl
from jax.experimental.pallas import tpu as pltpu

_VMEM_LIMIT = 48 * 1024 * 1024   # scoped-VMEM budget, safe on v5e/v6e (128 MiB) and v7x (64 MiB)


def _round_up(x, m):
    return (x + m - 1) // m * m


# ----------------------------- Kernel 1: fused Q/K/V projection ------------------------------

def _qkv_kernel(x_ref, w_ref, b_ref, qkv_ref):
    qkv_ref[...] = (
        jnp.dot(x_ref[...], w_ref[...], preferred_element_type=jnp.float32)
        + b_ref[...])


def qkv_projection(x, w_qkv, b_qkv, *, tile_n=512):
    n, fin = x.shape
    d3 = w_qkv.shape[1]
    tile_n = min(tile_n, _round_up(n, 8))          # multiple of 8 sublanes
    n_pad = _round_up(n, tile_n)
    if n_pad != n:
        x = jnp.pad(x, ((0, n_pad - n), (0, 0)))   # pad nodes instead of disabling tiling
    out = pl.pallas_call(
        _qkv_kernel,
        out_shape=jax.ShapeDtypeStruct((n_pad, d3), jnp.float32),
        grid_spec=pltpu.PrefetchScalarGridSpec(
            num_scalar_prefetch=0,
            grid=(n_pad // tile_n,),
            in_specs=[pl.BlockSpec((tile_n, fin), lambda i: (i, 0)),
                      pl.BlockSpec((fin, d3), lambda i: (0, 0)),
                      pl.BlockSpec((1, d3), lambda i: (0, 0))],
            out_specs=pl.BlockSpec((tile_n, d3), lambda i: (i, 0))),
        compiler_params=pltpu.CompilerParams(
            dimension_semantics=("parallel",),
            vmem_limit_bytes=_VMEM_LIMIT),
        cost_estimate=pl.CostEstimate(
            flops=2 * n_pad * fin * d3,
            transcendentals=0,
            bytes_accessed=4 * (n_pad * fin + fin * d3 + d3 + n_pad * d3)),
    )(x, w_qkv, b_qkv)
    return out[:n] if n_pad != n else out


# ---------------- Kernel 2 (pass A): edge logits + online per-node (max, sum) ----------------

def _edge_logits_online_kernel(e0_ref, e1_ref, qT_ref, kT_ref,
                               prods_ref, nmax_ref, nsum_ref,
                               *, n_nodes, heads, d_k, norm_idx):
    te = e0_ref.shape[1]
    d = heads * d_k

    @pl.when(pl.program_id(0) == 0)
    def _init():
        nmax_ref[...] = jnp.full(nmax_ref.shape, -1e30, jnp.float32)
        nsum_ref[...] = jnp.zeros(nsum_ref.shape, jnp.float32)

    # One-hot edge->node incidence, node-major [N, TE] (edges dense in lanes).
    node_iota = lax.broadcasted_iota(jnp.int32, (n_nodes, te), 0)
    oh_src_b = node_iota == e0_ref[...]                      # [N, TE] bool
    oh_dst_b = node_iota == e1_ref[...]                      # [N, TE] bool
    oh_src = oh_src_b.astype(jnp.float32)
    oh_dst = oh_dst_b.astype(jnp.float32)
    oh_seg_b = oh_src_b if norm_idx == 0 else oh_dst_b       # static Python choice
    oh_seg = oh_src if norm_idx == 0 else oh_dst

    # Row gathers on the MXU, transposed so edges stay in lanes: [D, TE].
    srcT = jnp.dot(qT_ref[...], oh_src, preferred_element_type=jnp.float32)
    dstT = jnp.dot(kT_ref[...], oh_dst, preferred_element_type=jnp.float32)

    # Per-head sum over d_k via a tiny [H, D] indicator matmul -> lane-dense [H, TE].
    row_h = lax.broadcasted_iota(jnp.int32, (heads, d), 0)
    col_h = lax.broadcasted_iota(jnp.int32, (heads, d), 1) // d_k
    red = (row_h == col_h).astype(jnp.float32)
    scale = jnp.float32(1.0 / math.sqrt(d_k))
    prods = jnp.dot(red, srcT * dstT, preferred_element_type=jnp.float32) * scale
    prods_ref[...] = prods                                   # [H, TE]

    # Per-node segment max over this tile: [N, H] (where on the boolean one-hot).
    neg = jnp.float32(-1e30)
    cols = []
    for h in range(heads):
        masked = jnp.where(oh_seg_b, prods[h:h + 1, :], neg)   # [N, TE]
        cols.append(jnp.max(masked, axis=1, keepdims=True))    # [N, 1]
    tile_max = jnp.concatenate(cols, axis=1)                   # [N, H]

    # Flash-style online update of the running (max, rescaled sum).
    m_old = nmax_ref[...]                                      # [N, H]
    m_new = jnp.maximum(m_old, tile_max)
    # gather m_new per edge: [H, TE] = m_new[N,H]^T @ oh_seg[N,TE]
    mxe = lax.dot_general(m_new, oh_seg,
                          dimension_numbers=(((0,), (0,)), ((), ())),
                          preferred_element_type=jnp.float32)
    exp_p = jnp.exp(prods - mxe)                               # [H, TE]
    # segment sum of exp: [N, H] = oh_seg[N,TE] @ exp_p[H,TE]^T
    # (padding edges have an all-zero one-hot column -> contribute nothing)
    l_tile = lax.dot_general(oh_seg, exp_p,
                             dimension_numbers=(((1,), (1,)), ((), ())),
                             preferred_element_type=jnp.float32)
    alpha = jnp.exp(m_old - m_new)                             # rescale of old sum
    nsum_ref[...] = nsum_ref[...] * alpha + l_tile
    nmax_ref[...] = m_new


# ------------------------- Kernel 3 (pass B): gather stats + normalise -----------------------

def _edge_normalize_kernel(seg_ref, prods_ref, nmax_ref, nsum_ref, att_ref, *, n_nodes):
    te = seg_ref.shape[1]
    node_iota = lax.broadcasted_iota(jnp.int32, (n_nodes, te), 0)
    oh_seg = (node_iota == seg_ref[...]).astype(jnp.float32)        # [N, TE]
    mxe = lax.dot_general(nmax_ref[...], oh_seg,
                          dimension_numbers=(((0,), (0,)), ((), ())),
                          preferred_element_type=jnp.float32)       # [H, TE]
    sme = lax.dot_general(nsum_ref[...], oh_seg,
                          dimension_numbers=(((0,), (0,)), ((), ())),
                          preferred_element_type=jnp.float32)       # [H, TE]
    inv = pl.reciprocal(sme + jnp.float32(1e-16), approx=True)      # EUP slot
    att_ref[...] = jnp.exp(prods_ref[...] - mxe) * inv


# -------------------------------------- Edge-softmax wrapper ---------------------------------

def _edge_tile(e, n_nodes, max_tile=2048, budget_bytes=24 * 1024 * 1024):
    """Edge-tile width (multiple of 128) such that the ~4 live [N, TE] f32 one-hot
    temporaries stay within a VMEM budget (leaves headroom under _VMEM_LIMIT)."""
    per_col = 4 * n_nodes * 4
    te_budget = max(128, (budget_bytes // max(per_col, 1)) // 128 * 128)
    return max(128, min(max_tile, te_budget, _round_up(e, 128)))


def edge_softmax_attention(q, k, edge, norm_idx, heads, d_k, *, max_edge_tile=2048):
    assert norm_idx in (0, 1)
    n, d = q.shape
    e = edge.shape[1]
    max_edge_tile = max(128, (max_edge_tile // 128) * 128)
    te = _edge_tile(e, n, max_tile=max_edge_tile)
    e_pad = _round_up(e, te)
    n_tiles = e_pad // te

    e0 = edge[0].astype(jnp.int32)
    e1 = edge[1].astype(jnp.int32)
    if e_pad != e:
        # dummy edges: node id == n -> all-zero one-hot column, no effect on stats
        pad = jnp.full((e_pad - e,), n, dtype=jnp.int32)
        e0 = jnp.concatenate([e0, pad])
        e1 = jnp.concatenate([e1, pad])
    e0r = e0.reshape(1, e_pad)
    e1r = e1.reshape(1, e_pad)

    qT = q.T    # [D, N], transposed once in XLA so in-kernel matmuls keep edges in lanes
    kT = k.T

    edge_row_spec = lambda: pl.BlockSpec((1, te), lambda t: (0, t))
    edge_he_spec = lambda: pl.BlockSpec((heads, te), lambda t: (0, t))
    resident = lambda shape: pl.BlockSpec(shape, lambda t: (0, 0))

    # ---- pass A: logits + grid-resident online (max, rescaled sum) per node ----
    kern_a = functools.partial(_edge_logits_online_kernel, n_nodes=n,
                               heads=heads, d_k=d_k, norm_idx=norm_idx)
    prods_he, node_max, node_sum = pl.pallas_call(
        kern_a,
        out_shape=(jax.ShapeDtypeStruct((heads, e_pad), jnp.float32),
                   jax.ShapeDtypeStruct((n, heads), jnp.float32),
                   jax.ShapeDtypeStruct((n, heads), jnp.float32)),
        grid_spec=pltpu.PrefetchScalarGridSpec(
            num_scalar_prefetch=0,
            grid=(n_tiles,),
            in_specs=[edge_row_spec(), edge_row_spec(),
                      resident((d, n)), resident((d, n))],
            out_specs=[edge_he_spec(), resident((n, heads)), resident((n, heads))]),
        compiler_params=pltpu.CompilerParams(
            dimension_semantics=("arbitrary",),
            vmem_limit_bytes=_VMEM_LIMIT),
        cost_estimate=pl.CostEstimate(
            flops=4 * e_pad * n * d + 2 * e_pad * d * heads + 8 * e_pad * n * heads,
            transcendentals=e_pad * heads + 2 * n * heads,
            bytes_accessed=4 * (2 * e_pad + 2 * n * d + heads * e_pad + 4 * n * heads)),
    )(e0r, e1r, qT, kT)

    # ---- pass B: att = exp(logit - m[seg]) / l[seg]  ("parallel" over edge tiles) ----
    seg_r = e0r if norm_idx == 0 else e1r
    kern_b = functools.partial(_edge_normalize_kernel, n_nodes=n)
    att_he = pl.pallas_call(
        kern_b,
        out_shape=jax.ShapeDtypeStruct((heads, e_pad), jnp.float32),
        grid_spec=pltpu.PrefetchScalarGridSpec(
            num_scalar_prefetch=0,
            grid=(n_tiles,),
            in_specs=[edge_row_spec(), edge_he_spec(),
                      resident((n, heads)), resident((n, heads))],
            out_specs=edge_he_spec()),
        compiler_params=pltpu.CompilerParams(
            dimension_semantics=("parallel",),
            vmem_limit_bytes=_VMEM_LIMIT),
        cost_estimate=pl.CostEstimate(
            flops=4 * e_pad * n * heads + 2 * e_pad * heads,
            transcendentals=e_pad * heads,
            bytes_accessed=4 * (e_pad + 2 * heads * e_pad + 2 * n * heads)),
    )(seg_r, prods_he, node_max, node_sum)

    return att_he[:, :e].T        # back to the module's [E, heads]


# --------------------------------------- Module wrapper --------------------------------------

class SpGraphTransAttentionLayerPallas:
    """Pallas re-implementation of SpGraphTransAttentionLayer.forward."""

    def __init__(self, in_features, out_features, opt, key):
        self.in_features = in_features
        self.out_features = out_features
        self.opt = opt
        self.h = int(opt['heads'])
        self.attention_dim = opt.get('attention_dim', out_features)
        assert self.attention_dim % self.h == 0
        self.d_k = self.attention_dim // self.h
        # weights: nn.init.constant_(weight, 1e-5); biases: deterministic uniform init
        bound = 1.0 / math.sqrt(in_features)
        kq, kk, kv = jax.random.split(key, 3)

        def make(kb):
            w = jnp.full((in_features, self.attention_dim), 1e-5, jnp.float32)
            b = jax.random.uniform(kb, (1, self.attention_dim), jnp.float32, -bound, bound)
            return w, b

        self.Wq, self.bq = make(kq)
        self.Wk, self.bk = make(kk)
        self.Wv, self.bv = make(kv)
        # fused projection: x @ [Wq | Wk | Wv] + [bq | bk | bv]
        self.W_qkv = jnp.concatenate([self.Wq, self.Wk, self.Wv], axis=1)
        self.b_qkv = jnp.concatenate([self.bq, self.bk, self.bv], axis=1)
        # self.activation / self.Wout exist in the torch module but are unused in forward.

    def __call__(self, x, edge):
        n = x.shape[0]
        d = self.attention_dim
        qkv = qkv_projection(x, self.W_qkv, self.b_qkv)
        q, k, v = qkv[:, :d], qkv[:, d:2 * d], qkv[:, 2 * d:]
        att = edge_softmax_attention(
            q, k, edge, self.opt['attention_norm_idx'], self.h, self.d_k,
            max_edge_tile=self.opt.get('max_edge_tile', 2048))
        v = v.reshape(n, self.h, self.d_k).transpose(0, 2, 1)   # [N, d_k, heads]
        return att, v


# --------------------------------- Reference (pure JAX) --------------------------------------

def reference_forward(x, edge, layer):
    q = x @ layer.Wq + layer.bq
    k = x @ layer.Wk + layer.bk
    v = x @ layer.Wv + layer.bv
    n = x.shape[0]
    h, d_k = layer.h, layer.d_k
    q = q.reshape(n, h, d_k).transpose(0, 2, 1)
    k = k.reshape(n, h, d_k).transpose(0, 2, 1)
    v = v.reshape(n, h, d_k).transpose(0, 2, 1)
    src = q[edge[0]]
    dst = k[edge[1]]
    prods = jnp.sum(src * dst, axis=1) / np.sqrt(d_k)                # [E, H]
    seg = edge[layer.opt['attention_norm_idx']]
    mx = jax.ops.segment_max(prods, seg, num_segments=n)
    ex = jnp.exp(prods - mx[seg])
    s = jax.ops.segment_sum(ex, seg, num_segments=n)
    att = ex / (s[seg] + 1e-16)
    return att, v


if __name__ == "__main__":
    key = jax.random.PRNGKey(0)

    base_opt = {
        'leaky_relu_slope': 0.2,
        'heads': 4,
        'attention_dim': 16,
        'reweight_attention': False,
        'attention_norm_idx': 0,
    }

    def run_case(n_nodes, fin, n_edges, opt, case_key):
        kx, ke, kp = jax.random.split(case_key, 3)
        layer = SpGraphTransAttentionLayerPallas(fin, opt['attention_dim'], opt, kp)
        x = jax.random.normal(kx, (n_nodes, fin), jnp.float32)
        edge = jax.random.randint(ke, (2, n_edges), 0, n_nodes, jnp.int32)
        att, v = layer(x, edge)
        jax.block_until_ready((att, v))
        att_ref, v_ref = reference_forward(x, edge, layer)
        np.testing.assert_allclose(np.asarray(v), np.asarray(v_ref), rtol=2e-4, atol=1e-5)
        # looser tolerance on att: approx EUP reciprocal in the normalise pass
        np.testing.assert_allclose(np.asarray(att), np.asarray(att_ref), rtol=5e-3, atol=5e-4)

    k1, k2 = jax.random.split(key)
    # primary small case (no padding, single edge tile)
    run_case(64, 32, 128, dict(base_opt), k1)
    # exercises edge padding, multi-tile online-softmax accumulation and norm_idx=1
    run_case(72, 32, 300, dict(base_opt, attention_norm_idx=1, max_edge_tile=128), k2)

    print("KERNEL_OK")
</pallas_src>

<mosaic_0001>
module attributes {stable_mosaic.version = 11 : i64} {
  func.func @_qkv_kernel(%arg0: i32, %arg1: memref<64x32xf32, #tpu.memory_space<vmem>>, %arg2: memref<32x48xf32, #tpu.memory_space<vmem>>, %arg3: memref<1x48xf32, #tpu.memory_space<vmem>>, %arg4: memref<64x48xf32, #tpu.memory_space<vmem>>) attributes {dimension_semantics = [#tpu.dimension_semantics<parallel>], iteration_bounds = array<i64: 1>, scalar_prefetch = 0 : i64, scratch_operands = 0 : i64, tpu.core_type = #tpu.core_type<tc>, window_params = [{transform_indices = @transform_0, window_bounds = array<i64: 64, 32>}, {pipeline_mode = #tpu.pipeline_mode<synchronous>, transform_indices = @transform_1, window_bounds = array<i64: 32, 48>}, {pipeline_mode = #tpu.pipeline_mode<synchronous>, transform_indices = @transform_2, window_bounds = array<i64: 1, 48>}, {transform_indices = @transform_3, window_bounds = array<i64: 64, 48>}]} {
    %c0 = arith.constant 0 : index
    %c0_0 = arith.constant 0 : index
    %0 = vector.load %arg1[%c0, %c0_0] : memref<64x32xf32, #tpu.memory_space<vmem>>, vector<64x32xf32>
    %c0_1 = arith.constant 0 : index
    %c0_2 = arith.constant 0 : index
    %1 = vector.load %arg2[%c0_1, %c0_2] : memref<32x48xf32, #tpu.memory_space<vmem>>, vector<32x48xf32>
    %cst = arith.constant dense<0.000000e+00> : vector<64x48xf32>
    %2 = tpu.matmul %0, %1, %cst {dimension_numbers = #tpu.dot_dimension_numbers<[1], [0], [0], [1], [0, 0, 1, 1], [], []>} : vector<64x32xf32>, vector<32x48xf32>, vector<64x48xf32> -> vector<64x48xf32>
    %c0_3 = arith.constant 0 : index
    %c0_4 = arith.constant 0 : index
    %3 = vector.load %arg3[%c0_3, %c0_4] : memref<1x48xf32, #tpu.memory_space<vmem>>, vector<1x48xf32>
    %4 = vector.broadcast %3 : vector<1x48xf32> to vector<64x48xf32>
    %5 = arith.addf %2, %4 : vector<64x48xf32>
    %c0_5 = arith.constant 0 : index
    %c0_6 = arith.constant 0 : index
    %6 = vector.load %arg4[%c0_5, %c0_6] : memref<64x48xf32, #tpu.memory_space<vmem>>, vector<64x48xf32>
    tpu.vector_store %arg4[%c0_5, %c0_6], %5 {strides = array<i32>} : memref<64x48xf32, #tpu.memory_space<vmem>>, vector<64x48xf32>,
    return
  }
  func.func @transform_0(%arg0: i32) -> (i32, i32) {
    %c0_i32 = arith.constant 0 : i32
    %c0_i32_0 = arith.constant 0 : i32
    return %arg0, %c0_i32 : i32, i32
  }
  func.func @transform_1(%arg0: i32) -> (i32, i32) {
    %c0_i32 = arith.constant 0 : i32
    %c0_i32_0 = arith.constant 0 : i32
    %c0_i32_1 = arith.constant 0 : i32
    return %c0_i32, %c0_i32_0 : i32, i32
  }
  func.func @transform_2(%arg0: i32) -> (i32, i32) {
    %c0_i32 = arith.constant 0 : i32
    %c0_i32_0 = arith.constant 0 : i32
    %c0_i32_1 = arith.constant 0 : i32
    return %c0_i32, %c0_i32_0 : i32, i32
  }
  func.func @transform_3(%arg0: i32) -> (i32, i32) {
    %c0_i32 = arith.constant 0 : i32
    %c0_i32_0 = arith.constant 0 : i32
    return %arg0, %c0_i32 : i32, i32
  }
}

</mosaic_0001>

<bundles_post_ra>
// kernel: tpu_custom_call.1
= control target key start
LH: loop header
LB: loop body
LE: loop exit
PB: predicated region body
PF: predicated region fallthrough
CT: control target
= control target key end

     0   :  { %vm33_vm0 = vcmask 261120   ;;  %vm163_vm1 = vcmask 392192   ;;  %s328_s1 = inlined_call_operand.vmem [shape: f32[32,48], index: 1, kind: input, shape index: {}]   ;;  %s329_s0 = inlined_call_operand.vmem [shape: f32[64,32], index: 0, kind: input, shape index: {}]   ;;  %s330_s2 = inlined_call_operand.vmem [shape: f32[1,48], index: 2, kind: input, shape index: {}]   ;;  %s331_s3 = inlined_call_operand.vmem [shape: f32[64,48], index: 3, kind: output, shape index: {}]  }
   0x1   :  { %v22_v0 = vld [vmem:[%s328_s1] sm:$0xff]  ;;  %v23_v1 = vld [vmem:[%s328_s1 + $0x8] sm:$0xff]  ;;  %v24_v2 = vld [vmem:[%s328_s1 + $0x10] sm:$0xff] }
   0x2   :  { %v217_v3 = vpack.c.bf16 %v23_v1, %v22_v0  ;;  %v25_v4 = vld [vmem:[%s328_s1 + $0x18] sm:$0xff]  ;;  %v14_v5 = vld [vmem:[%s329_s0] sm:$0xff]  ;;  %v15_v8 = vld [vmem:[%s329_s0 + $0x8] sm:$0xff] }
   0x3   :  { %v18_v6 = vld [vmem:[%s329_s0 + $0x20] sm:$0xff]  ;;  %v221_v7 = vpack.c.bf16 %v25_v4, %v24_v2  ;;  %205 = vmatprep.mubr.msk.f32.mxu0 %vm33_vm0, %v14_v5  ;;  %v19_v9 = vld [vmem:[%s329_s0 + $0x28] sm:$0xff]  ;;  %v16_v10 = vld [vmem:[%s329_s0 + $0x10] sm:$0xff] }
   0x4   :  { %211 = vmatprep.mubr.msk.f32.mxu1 %vm33_vm0, %v18_v6  ;;  %218 = vmatprep.subr.bf16.mxu0 %v217_v3  ;;  %v20_v11 = vld [vmem:[%s329_s0 + $0x30] sm:$0xff]  ;;  %v17_v12 = vld [vmem:[%s329_s0 + $0x18] sm:$0xff]  ;;  %v176_v14 = vld [vmem:[%s330_s2] ss:$0 sm:$0xff] }
   0x5   :  { %225 = vmatprep.subr.bf16.mxu1 %v217_v3  ;;  %220 = vmatpush3.bf16.msra.mxu0 %v217_v3  ;;  %v21_v13 = vld [vmem:[%s329_s0 + $0x38] sm:$0xff] }
   0x6   :  { %227 = vmatpush3.bf16.msra.mxu1 %v217_v3  ;;  %222 = vmatprep.subr.bf16.mxu0 %v221_v7 }
   0x7   :  { %226 = vmatprep.subr.bf16.mxu1 %v221_v7 }
   0x9   :  { %224 = vmatpush3.bf16.msra.mxu0 %v221_v7 }
   0xa   :  { %228 = vmatpush3.bf16.msra.mxu1 %v221_v7 }
   0xc   :  { %206 = vmatmul.mubr.msk.f32.vlgmr.msra.gmra.mrb[0].mxu0 %vm33_vm0, %v15_v8 }
   0xd   :  { %212 = vmatmul.mubr.msk.f32.vlgmr.msra.gmra.mrb[0].mxu1 %vm33_vm0, %v19_v9  ;;  %208 = vmatprep.mubr.msk.f32.mxu0 %vm33_vm0, %v16_v10 }
   0xe   :  { %214 = vmatprep.mubr.msk.f32.mxu1 %vm33_vm0, %v20_v11 }
  0x10   :  { %209 = vmatmul.mubr.msk.f32.gmra.mrb[2].mxu0 %vm33_vm0, %v17_v12 }
  0x11   :  { %215 = vmatmul.mubr.msk.f32.gmra.mrb[2].mxu1 %vm33_vm0, %v21_v13 }
  0xdf   :  { %v207_v15 = vpop.f32.mrb[0].mxu0 }
  0xe0   :  { %v213_v16 = vpop.f32.mrb[0].mxu1  ;;  %v130_v17 = vadd.f32 %v207_v15, %v176_v14  ;;  %v124_v19 = vpop.f32.mrb[1].mxu0 }
  0xe1   :  { %v150_v18 = vadd.f32 %v213_v16, %v176_v14  ;;  %v144_v20 = vpop.f32.mrb[1].mxu1  ;;  %v125_v21 = vadd.f32 %v176_v14, %v124_v19 }
  0xe2   :  { %v145_v22 = vadd.f32 %v176_v14, %v144_v20  ;;  %165 = vst.msk [vmem:[%s331_s3 + $0x8] sm:$0xff] %vm163_vm1, %v130_v17 }
  0xe3   :  { %169 = vst.msk [vmem:[%s331_s3 + $0x28] sm:$0xff] %vm163_vm1, %v150_v18  ;;  %164 = vst.msk [vmem:[%s331_s3] sm:$0xff] %vm163_vm1, %v125_v21  ;;  %v210_v23 = vpop.f32.mrb[2].mxu0 }
  0xe4   :  { %168 = vst.msk [vmem:[%s331_s3 + $0x20] sm:$0xff] %vm163_vm1, %v145_v22  ;;  %v216_v24 = vpop.f32.mrb[2].mxu1  ;;  %v140_v25 = vadd.f32 %v210_v23, %v176_v14  ;;  %v134_v27 = vpop.f32.mrb[3].mxu0 }
  0xe5   :  { %v160_v26 = vadd.f32 %v216_v24, %v176_v14  ;;  %v154_v28 = vpop.f32.mrb[3].mxu1  ;;  %v135_v29 = vadd.f32 %v176_v14, %v134_v27 }
  0xe6   :  { %v155_v30 = vadd.f32 %v176_v14, %v154_v28  ;;  %167 = vst.msk [vmem:[%s331_s3 + $0x18] sm:$0xff] %vm163_vm1, %v140_v25 }
  0xe7   :  { %171 = vst.msk [vmem:[%s331_s3 + $0x38] sm:$0xff] %vm163_vm1, %v160_v26  ;;  %166 = vst.msk [vmem:[%s331_s3 + $0x10] sm:$0xff] %vm163_vm1, %v135_v29 }
  0xe8   :  { %170 = vst.msk [vmem:[%s331_s3 + $0x30] sm:$0xff] %vm163_vm1, %v155_v30 }

</bundles_post_ra>
